<compile_context>
chip_gen: v7x
topology: tpu7x:2x2x1
jax: 0.10.0
libtpu: 0.0.40
codegen_flags: <defaults>
</compile_context>

<pallas_src>
import math
import jax
import jax.numpy as jnp
from jax.experimental import pallas as pl
from jax.experimental.pallas import tpu as pltpu


def _to_3tuple(v):
    return tuple(v) if isinstance(v, (tuple, list)) else (v, v, v)


# ----------------------------- Pallas kernel --------------------------------
def _adaptive_pad_pallas(x4, out_thw, off_thw):
    """x4: (BC, T, H, W) -> (BC, To, Ho, Wo) zero-padded copy.

    off_thw are the static low-side pad offsets (pd0, ph0, pw0)."""
    bc, t, h, w = x4.shape
    to, ho, wo = out_thw
    pd0, ph0, pw0 = off_thw
    dtype = x4.dtype

    def kernel(x_ref, o_ref):
        # x_ref: (H, W) input plane; o_ref: (Ho, Wo) padded output plane.
        tp = pl.program_id(1)
        o_ref[...] = jnp.zeros_like(o_ref)           # pad region (and border)

        @pl.when((tp >= pd0) & (tp < pd0 + t))       # plane maps onto input?
        def _():
            # Static offsets/sizes -> plain (possibly masked) vector stores.
            o_ref[pl.ds(ph0, h), pl.ds(pw0, w)] = x_ref[...]

    def x_index_map(i, tp):
        # Clamp the source plane index for pure-pad planes; that DMA's data is
        # never read (the pl.when above skips the copy), it just keeps the
        # block index in range.
        tin = jnp.clip(tp - pd0, 0, t - 1)
        return (i, tin, 0, 0)

    itemsize = jnp.dtype(dtype).itemsize
    cost = pl.CostEstimate(
        flops=0,
        transcendentals=0,
        bytes_accessed=(bc * t * h * w + bc * to * ho * wo) * itemsize)

    return pl.pallas_call(
        kernel,
        out_shape=jax.ShapeDtypeStruct((bc, to, ho, wo), dtype),
        grid_spec=pltpu.PrefetchScalarGridSpec(
            num_scalar_prefetch=0,
            grid=(bc, to),
            in_specs=[pl.BlockSpec((None, None, h, w), x_index_map)],
            out_specs=pl.BlockSpec((None, None, ho, wo),
                                   lambda i, tp: (i, tp, 0, 0)),
        ),
        compiler_params=pltpu.CompilerParams(
            dimension_semantics=("parallel", "parallel")),
        cost_estimate=cost,
    )(x4)


# ----------------------------- Module wrapper --------------------------------
class AdaptivePadding3DPallas:
    """Pallas TPU version of AdaptivePadding (3-D, on (B, C, T, H, W))."""

    def __init__(self, kernel_size=1, stride=1, dilation=1, padding='corner'):
        assert padding in ('same', 'corner')
        self.kernel_size = _to_3tuple(kernel_size)
        self.stride = _to_3tuple(stride)
        self.dilation = _to_3tuple(dilation)
        self.padding = padding

    def get_pad_shape(self, input_shape):
        t, h, w = input_shape
        kd, kh, kw = self.kernel_size
        sd, sh, sw = self.stride
        dd, dh, dw = self.dilation
        od, oh, ow = math.ceil(t / sd), math.ceil(h / sh), math.ceil(w / sw)
        pad_d = max((od - 1) * sd + (kd - 1) * dd + 1 - t, 0)
        pad_h = max((oh - 1) * sh + (kh - 1) * dh + 1 - h, 0)
        pad_w = max((ow - 1) * sw + (kw - 1) * dw + 1 - w, 0)
        return pad_d, pad_h, pad_w

    def __call__(self, x):
        """x: (B, C, T, H, W) -> zero-padded (B, C, To, Ho, Wo)."""
        b, c, t, h, w = x.shape
        pad_d, pad_h, pad_w = self.get_pad_shape((t, h, w))
        if pad_d == 0 and pad_h == 0 and pad_w == 0:
            return x                                  # fast path: no copy

        if self.padding == 'corner':
            pd0, ph0, pw0 = 0, 0, 0
        else:  # 'same'
            pd0, ph0, pw0 = pad_d // 2, pad_h // 2, pad_w // 2
        to, ho, wo = t + pad_d, h + pad_h, w + pad_w

        # Merge (B, C) -> leading grid axis (contiguous dims: free reshape).
        x4 = x.reshape(b * c, t, h, w)
        out4 = _adaptive_pad_pallas(x4, (to, ho, wo), (pd0, ph0, pw0))
        return out4.reshape(b, c, to, ho, wo)


# ----------------------------- reference (plain JAX) -------------------------
def _reference(x, module):
    pd, ph, pw = module.get_pad_shape(x.shape[-3:])
    if module.padding == 'corner':
        widths = ((0, 0), (0, 0), (0, pd), (0, ph), (0, pw))
    else:
        widths = ((0, 0), (0, 0),
                  (pd // 2, pd - pd // 2),
                  (ph // 2, ph - ph // 2),
                  (pw // 2, pw - pw // 2))
    return jnp.pad(x, widths)


if __name__ == "__main__":
    key = jax.random.PRNGKey(0)
    B, C, T, H, W = 2, 3, 6, 9, 9
    x = jax.random.normal(key, (B, C, T, H, W), dtype=jnp.float32)

    # --- 'corner' mode: kernel=stride=(2,4,4) -> pads (0,3,3), out (6,12,12)
    mod_c = AdaptivePadding3DPallas(kernel_size=(2, 4, 4), stride=(2, 4, 4),
                                    dilation=1, padding='corner')
    out_c = jax.block_until_ready(mod_c(x))
    ref_c = _reference(x, mod_c)
    assert out_c.shape == (B, C, 6, 12, 12), out_c.shape
    assert bool(jnp.array_equal(out_c, ref_c)), "corner mode mismatch"

    # --- 'same' mode: kernel=(3,4,4), stride=(2,4,4) -> pads (1,3,3) with
    #     non-zero low-side offsets (0,1,1), out (7,12,12)
    mod_s = AdaptivePadding3DPallas(kernel_size=(3, 4, 4), stride=(2, 4, 4),
                                    dilation=1, padding='same')
    out_s = jax.block_until_ready(mod_s(x))
    ref_s = _reference(x, mod_s)
    assert out_s.shape == ref_s.shape == (B, C, 7, 12, 12), out_s.shape
    assert bool(jnp.array_equal(out_s, ref_s)), "same mode mismatch"

    # --- already-divisible input: fast path returns the input unchanged
    x2 = jax.random.normal(key, (1, 2, 4, 8, 8), dtype=jnp.float32)
    mod_n = AdaptivePadding3DPallas(kernel_size=(2, 4, 4), stride=(2, 4, 4))
    out_n = jax.block_until_ready(mod_n(x2))
    assert out_n.shape == x2.shape
    assert bool(jnp.array_equal(out_n, x2))

    print("KERNEL_OK")
</pallas_src>

<mosaic_0001>
module attributes {stable_mosaic.version = 11 : i64} {
  func.func @kernel(%arg0: i32, %arg1: i32, %arg2: memref<1x1x9x9xf32, #tpu.memory_space<vmem>>, %arg3: memref<1x1x12x12xf32, #tpu.memory_space<vmem>>) attributes {dimension_semantics = [#tpu.dimension_semantics<parallel>, #tpu.dimension_semantics<parallel>], iteration_bounds = array<i64: 6, 6>, scalar_prefetch = 0 : i64, scratch_operands = 0 : i64, tpu.core_type = #tpu.core_type<tc>, window_params = [{transform_indices = @transform_0, window_bounds = array<i64: 1, 1, 9, 9>}, {transform_indices = @transform_1, window_bounds = array<i64: 1, 1, 12, 12>}]} {
    %cst = arith.constant 0.000000e+00 : f32
    %0 = vector.broadcast %cst : f32 to vector<12x12xf32>
    %c0 = arith.constant 0 : index
    %c0_0 = arith.constant 0 : index
    %c0_1 = arith.constant 0 : index
    %c0_2 = arith.constant 0 : index
    %1 = vector.load %arg3[%c0, %c0_0, %c0_1, %c0_2] : memref<1x1x12x12xf32, #tpu.memory_space<vmem>>, vector<1x1x12x12xf32>
    %2 = vector.shape_cast %1 : vector<1x1x12x12xf32> to vector<12x12xf32>
    %3 = vector.shape_cast %0 : vector<12x12xf32> to vector<1x1x12x12xf32>
    tpu.vector_store %arg3[%c0, %c0_0, %c0_1, %c0_2], %3 {strides = array<i32>} : memref<1x1x12x12xf32, #tpu.memory_space<vmem>>, vector<1x1x12x12xf32>,
    %c0_i32 = arith.constant 0 : i32
    %4 = arith.cmpi sge, %arg1, %c0_i32 : i32
    %c6_i32 = arith.constant 6 : i32
    %5 = arith.cmpi slt, %arg1, %c6_i32 : i32
    %6 = arith.andi %4, %5 : i1
    %7 = arith.extui %6 : i1 to i32
    %c0_i32_3 = arith.constant 0 : i32
    %8 = arith.cmpi ne, %7, %c0_i32_3 : i32
    scf.if %8 {
      %c0_4 = arith.constant 0 : index
      %c0_5 = arith.constant 0 : index
      %c0_6 = arith.constant 0 : index
      %c0_7 = arith.constant 0 : index
      %9 = vector.load %arg2[%c0_4, %c0_5, %c0_6, %c0_7] : memref<1x1x9x9xf32, #tpu.memory_space<vmem>>, vector<1x1x9x9xf32>
      %10 = vector.shape_cast %9 : vector<1x1x9x9xf32> to vector<9x9xf32>
      %c0_8 = arith.constant 0 : index
      %c0_9 = arith.constant 0 : index
      %c0_10 = arith.constant 0 : index
      %c0_11 = arith.constant 0 : index
      %11 = vector.load %arg3[%c0_8, %c0_9, %c0_10, %c0_11] : memref<1x1x12x12xf32, #tpu.memory_space<vmem>>, vector<1x1x9x9xf32>
      %12 = vector.shape_cast %11 : vector<1x1x9x9xf32> to vector<9x9xf32>
      %13 = vector.shape_cast %10 : vector<9x9xf32> to vector<1x1x9x9xf32>
      tpu.vector_store %arg3[%c0_8, %c0_9, %c0_10, %c0_11], %13 {strides = array<i32>} : memref<1x1x12x12xf32, #tpu.memory_space<vmem>>, vector<1x1x9x9xf32>,
    } else {
    }
    return
  }
  func.func @transform_0(%arg0: i32, %arg1: i32) -> (i32, i32, i32, i32) {
    %c0_i32 = arith.constant 0 : i32
    %0 = arith.subi %arg1, %c0_i32 : i32
    %c0_i32_0 = arith.constant 0 : i32
    %c5_i32 = arith.constant 5 : i32
    %1 = arith.maxsi %c0_i32_0, %0 : i32
    %2 = arith.minsi %c5_i32, %1 : i32
    %c0_i32_1 = arith.constant 0 : i32
    %c0_i32_2 = arith.constant 0 : i32
    %c0_i32_3 = arith.constant 0 : i32
    return %arg0, %2, %c0_i32_1, %c0_i32_2 : i32, i32, i32, i32
  }
  func.func @transform_1(%arg0: i32, %arg1: i32) -> (i32, i32, i32, i32) {
    %c0_i32 = arith.constant 0 : i32
    %c0_i32_0 = arith.constant 0 : i32
    %c0_i32_1 = arith.constant 0 : i32
    return %arg0, %arg1, %c0_i32, %c0_i32_0 : i32, i32, i32, i32
  }
}

</mosaic_0001>

<bundles_post_ra>
// kernel: tpu_custom_call.1
= control target key start
LH: loop header
LB: loop body
LE: loop exit
PB: predicated region body
PF: predicated region fallthrough
CT: control target
= control target key end

     0   :  { %6 = vsyncpa [#allocation3], 0  ;;  %s655_s0 = inlined_call_operand.vmem [shape: f32[6,6,9,9], index: 0, kind: input, shape index: {}]   ;;  %s656_s1 = inlined_call_operand.hbm [shape: f32[6,6,12,12], index: 1, kind: output, shape index: {}]  }
   0x1   :  { %8 = vsyncpa [#allocation3 + $0x1], 0  ;;  %s508_s6 = smov 0   ;;  %s510_s7 = smov 0  }
   0x2   :  { %s512_s8 = smov 0   ;;  %s514_s9 = smov 0  }
   0x3   :  { %s516_s10 = smov 0   ;;  %s518_s11 = smov 0  }
   0x4   :  { %s520_s12 = smov 0   ;;  %s522_s13 = smov 0  }
   0x5 LB: > { %s288_s14 = sadd.s32 4294967295, %s492_s13   ;;  %s289_s15 = sadd.s32 4294967294, %s492_s13   ;;  %s492_s13 = sphi %s522_s13, %s14_s13   ;;  %s488_s12 = sphi %s520_s12, %s665_s12   ;;  %s484_s11 = sphi %s518_s11, %s664_s11   ;;  %s480_s10 = sphi %s516_s10, %s663_s10   ;;  %s476_s9 = sphi %s514_s9, %s662_s9   ;;  %s472_s8 = sphi %s512_s8, %s661_s8   ;;  %s468_s7 = sphi %s510_s7, %s660_s7   ;;  %s464_s6 = sphi %s508_s6, %s659_s6  }
   0x6   : > { %s23_s16 = sadd.s32 1, %s484_s11  ;;  %s26_s17 = sadd.s32 1, %s488_s12 }
   0x7   : > { %p24_p0 = scmp.ge.s32.totalorder %s23_s16, 6  ;;  %p81_p1 = scmp.ne.s32.totalorder %s472_s8, %s468_s7 }
   0x8   : > { %p82_p2 = scmp.eq.s32.totalorder %s288_s14, 35  ;;  %p87_p5 = scmp.ne.s32.totalorder %s468_s7, %s464_s6 }
   0x9   : > { %s667_s16 = smov (%p24_p0, %s23_s16), 0  ;;  %s669_s17 = smov (!%p24_p0, %s26_s17), %s488_s12 }
   0xa   : > { %s67_s18 = ssub.s32 %s484_s11, %s667_s16  ;;  %p559_p3 = por %p82_p2, %p81_p1 }
   0xb   : > { %p28_p4 = scmp.ge.s32.totalorder %s669_s17, 6  ;;  %p88_p6 = scmp.eq.s32.totalorder %s289_s15, 35 }
   0xc   : > { %p302_p7 = scmp.ge.s32.totalorder %s492_s13, 1  ;;  %p126_p9 = scmp.lt.s32.totalorder %s492_s13, 37 }
   0xd   : > { %s671_s17 = smov (%p28_p4, %s669_s17), 0  ;;  %p568_p8 = por %p88_p6, %p87_p5 }
   0xe   : > { %s66_s21 = ssub.s32 %s488_s12, %s671_s17  ;;  %s71_s22 = sadd.s32 1, %s472_s8 }
   0xf   : > { %s68_s23 = sor.u32 %s67_s18, %s66_s21  ;;  %p127_p10 = pnand %p302_p7, %p126_p9 }
  0x10   : > { %p69_p11 = scmp.eq.s32.totalorder %s68_s23, 0  ;;  %s151_s25 = sand.u32 (!%p127_p10), 1, %s468_s7   ;;  %vm171_vm0 = vcmask (!%p127_p10), 97280   ;;  %vm173_vm1 = vcmask (!%p127_p10), 93184   ;;  %v494_v0 = vmov (!%p127_p10), 0.0  }
  0x11   : > { %130 = sbr.rel (%p127_p10) target bundleno = 64 (0x40), region = 24  ;;  %p154_p12 = scmp.gt.s32.totalorder (!%p127_p10), %s476_s9, 0 }
  0x12   : > { %s577_s24 = scalar_select %p69_p11, %s472_s8, %s71_s22  }
  0x13   : > { %s303_s26 = sshll.u32 (!%p127_p10), %s151_s25, 4  ;;  %p304_p13 = scmp.lt.s32.totalorder (!%p127_p10), %s476_s9, 5 }
  0x14   : > { %p158_p0 = scmp.lt.s32.totalorder (!%p127_p10), %s480_s10, 5  ;;  %s153_s28 = scalar_lea.vmem (!%p127_p10), [#allocation2], %s303_s26 }
  0x15   : > { %172 = vst.msk [vmem:[%s153_s28] sm:$0xff] (!%p127_p10), %vm171_vm0, %v494_v0  ;;  %p175_p1 = scmp.ge.s32.totalorder (!%p127_p10), %s476_s9, 0  ;;  %p176_p4 = scmp.lt.s32.totalorder (!%p127_p10), %s476_s9, 6 }
  0x16   : > { %174 = vst.msk [vmem:[%s153_s28 + $0x8] sm:$0xf] (!%p127_p10), %vm173_vm1, %v494_v0 }
  0x17   : > { %p177_p5 = pnand (!%p127_p10), %p176_p4, %p175_p1 }
  0x18   : > { %s155_s27 = scalar_select %p154_p12, %s476_s9, 0 }
  0x19   : > { %s159_s29 = scalar_select %p158_p0, %s480_s10, 5 }
  0x1a   : > { %s673_s27 = smov (!%p304_p13, %s155_s27), 5  ;;  %vm183_vm2 = vcmask (!%p177_p5), 72704   ;;  %vm185_vm3 = vcmask (!%p177_p5), 65536  }
  0x1b   : > { %p160_p2 = scmp.lt.s32.totalorder %s673_s27, 5  ;;  %s322_s30 = smul.u32 12, %s159_s29 }
  0x1c   : > { %180 = sbr.rel (%p177_p5) target bundleno = 37 (0x25), region = 28 }
  0x1d   : > { %s675_s27 = smov (!%p160_p2, %s673_s27), 5 }
  0x1e   : > { %s309_s2 = sshll.u32 %s675_s27, 1 }
  0x1f   : > { %s164_s3 = sadd.s32 %s322_s30, %s309_s2 }
  0x20   : > { %s310_s4 = sshll.u32 %s164_s3, 3 }
  0x21   : > { %s166_s15 = scalar_lea.vmem %s655_s0, %s310_s4 }
  0x22   : > { %v181_v1 = vld [vmem:[%s166_s15] sm:$0xff] (!%p177_p5)  ;;  %v182_v2 = vld [vmem:[%s166_s15 + $0x8] sm:$0x1] (!%p177_p5) }
  0x23   : > { %184 = vst.msk [vmem:[%s153_s28] sm:$0xff] %vm183_vm2, %v181_v1 }
  0x24   : > { %186 = vst.msk [vmem:[%s153_s28 + $0x8] sm:$0x1] %vm185_vm3, %v182_v2 }
  0x25 PF: > { %s312_s18 = sshll.u32 %s476_s9, 1  ;;  %s323_s21 = smul.u32 12, %s480_s10 }
  0x26   : > { %s203_s22 = sshll.u32 %s153_s28, 4  ;;  %s603_s2 = scalar_lea.sflag [#allocation3], %s151_s25  ;;  %s594_s22 = int_to_ptr.vmem [resolvable:$true] %s203_s22 }
  0x27   : > { %s200_s23 = sadd.s32 %s323_s21, %s312_s18  ;;  %s398_s3 = scalar_lea.vmem %s594_s22, 256 }
  0x28   : > { %s313_s26 = sshll.u32 %s200_s23, 7  ;;  %p399_p6 = scmp.ne.s32.totalorder %s594_s22, %s398_s3 }
  0x29   : > { %s599_s30 = scalar_lea.hbm %s656_s1, %s313_s26  ;;  %s495_s9 = smov [#allocation2]  }
  0x2a   : > { %p400_p7 = pnand %p399_p6, %p559_p3  ;;  %s402_s10 = sshll.u32 %s495_s9, 4  ;;  %s403_s10 = int_to_ptr.vmem [resolvable:$false] %s402_s10 }
  0x2b   : > { %s404_s28 = scalar_lea.vmem %s403_s10, 512  ;;  %p405_p10 = scmp.lt.s32.totalorder %s594_s22, %s403_s10 }
  0x2c   : > { %p401_p9 = pneg %p400_p7  ;;  %p406_p11 = scmp.lt.s32.totalorder %s404_s28, %s398_s3 }
  0x2e   : > { %p407_p12 = por %p406_p11, %p405_p10 }
  0x30   : > { %p408_p13 = pnand %p407_p12, %p401_p9 }
  0x32   : > { %411 = shalt.err (!%p408_p13)
}
  0x33   : > { %s412_s25 = scalar_lea.hbm %s599_s30, 256  ;;  %s416_s14 = scalar_lea.hbm %s656_s1, 9216 }
  0x34   : > { %p413_p0 = scmp.ne.s32.totalorder %s599_s30, %s412_s25  ;;  %p417_p4 = scmp.lt.u32.totalorder %s599_s30, %s656_s1 }
  0x35   : > { %p418_p5 = scmp.lt.u32.totalorder %s416_s14, %s412_s25  ;;  %p420_p7 = scmp.lt.u32.totalorder %s412_s25, %s599_s30 }
  0x36   : > { %p414_p1 = pnand %p413_p0, %p559_p3 }
  0x37   : > { %p419_p6 = por %p418_p5, %p417_p4 }
  0x38   : > { %p415_p2 = pneg %p414_p1 }
  0x39   : > { %p421_p9 = por %p420_p7, %p419_p6 }
  0x3b   : > { %p422_p10 = pnand %p421_p9, %p415_p2 }
  0x3d   : > { %425 = shalt.err (!%p422_p10)
}
  0x3e   : > { %s496_s21 = smov 128   ;;  %s497_s23 = smov 8  }
  0x3f   : > { %324 = dma.vmem_to_hbm [thread:$0]  (%p559_p3), %s594_s22, 256, %s599_s30, %s603_s2, %s496_s21, %s496_s21, %s497_s23  }
  0x40 PF: > { %p330_p11 = scmp.ge.s32.totalorder %s492_s13, 2  ;;  %s218_s26 = sand.u32 1, %s464_s6  }
  0x41   : > { %s219_s27 = scalar_lea.sflag [#allocation3], %s218_s26 }
  0x42   : > { %p327_p12 = pnand %p330_p11, %p568_p8 }
  0x44   : > { %459 = dma.done.wait (!%p327_p12), %s219_s27, 256  }
  0x45   : > { %461 = vsyncadd (!%p327_p12), %s219_s27, 4294967040  ;;  %s14_s13 = sadd.s32 1, %s492_s13   ;;  %s659_s6 = smov %s468_s7 }
  0x46   : > { %p11_p13 = scmp.ge.s32.totalorder %s14_s13, 38   ;;  %s660_s7 = smov %s472_s8 }
  0x47   : > { %s661_s8 = smov %s577_s24  ;;  %s662_s9 = smov %s484_s11 }
  0x48   : > { %s663_s10 = smov %s488_s12  ;;  %s664_s11 = smov %s667_s16 }
  0x49   : > { %s665_s12 = smov %s671_s17  ;;  %13 = sbr.rel (!%p11_p13) target bundleno = 5 (0x5), region = 63 }
  0x50   :  { %224 = vsyncpa [#allocation3], 1 }
  0x51   :  { %226 = vsyncpa [#allocation3 + $0x1], 1 }

</bundles_post_ra>
